<compile_context>
chip_gen: v6e
topology: v6e:2x2x1
jax: 0.10.0
libtpu: 0.0.40
codegen_flags: <defaults>
</compile_context>

<pallas_src>
import functools

import numpy as np
import jax
import jax.numpy as jnp
from jax.experimental import pallas as pl
from jax.experimental.pallas import tpu as pltpu


def _scribble_pool_kernel(lab_ref, feat_ref, src_ref, offs_ref, *, max_len):
    """Grid = (B, n_c_chunks, n_hw_chunks); one (batch, C-chunk, HW-chunk) tile.

    lab_ref : (1, n_slots, hw_chunk) int32 0/1 labels, invalid slots pre-zeroed.
    feat_ref: (1, c_chunk, hw_chunk) feature tile (native channels-first).
    src_ref : (1, n_slots*max_len, c_chunk) f32 pooled output; same block index
              for every hw chunk -> resident in VMEM, used as the accumulator.
    offs_ref: (n_slots, 1) int32 scratch: #scribble pixels of each slot seen in
              previous hw chunks of this (b, c) pass (global-rank carry).
    """
    k = pl.program_id(2)

    @pl.when(k == 0)
    def _init():
        offs_ref[...] = jnp.zeros_like(offs_ref)
        src_ref[...] = jnp.zeros_like(src_ref)

    lab = lab_ref[0]                                   # (n_slots, chunk) int32
    feat = feat_ref[0]                                 # (c_chunk, chunk)
    n_slots, chunk = lab.shape
    m_rows = n_slots * max_len

    # Inclusive prefix sum of lab along the chunk: log-step roll + masked add.
    pos = jax.lax.broadcasted_iota(jnp.int32, (n_slots, chunk), 1)
    csum = lab
    shift = 1
    while shift < chunk:                               # static unroll, ceil(log2(chunk))
        rolled = pltpu.roll(csum, shift=shift, axis=1)
        csum = csum + jnp.where(pos >= shift, rolled, 0)
        shift *= 2

    # Global rank of each scribble pixel = local rank + carry from prev chunks.
    offs = offs_ref[...]                               # (n_slots, 1)
    rank = csum - 1 + offs                             # (n_slots, chunk)

    # key[s, p] = s*max_len + rank for slot s's first max_len scribble pixels,
    # else -1.  Slots are mutually exclusive per pixel (one-hot class map), so
    # a max over slots gives the single matching output-row id per pixel.
    slot_iota = jax.lax.broadcasted_iota(jnp.int32, (n_slots, chunk), 0)
    key = jnp.where((lab == 1) & (rank < max_len),
                    slot_iota * max_len + rank, -1)
    key_col = jnp.max(key, axis=0, keepdims=True)      # (1, chunk), XLU reduce

    # One-hot selection matrix: a single full-tile compare (no per-slot loop,
    # no VMEM round trip).
    m_iota = jax.lax.broadcasted_iota(jnp.int32, (m_rows, chunk), 0)
    sel = (m_iota == key_col).astype(feat.dtype)       # (m_rows, chunk)

    # q @ k.T-style MXU matmul contracting the lane (chunk) dim of both
    # operands (transposed RHS weight load; the big feat tile is not
    # relayouted).  Accumulate into the resident f32 output block (exact).
    pooled = jax.lax.dot_general(
        sel, feat, dimension_numbers=(((1,), (1,)), ((), ())),
        preferred_element_type=jnp.float32)            # (m_rows, c_chunk)
    src_ref[0] += pooled

    # Carry this chunk's per-slot scribble-pixel counts to the next chunk.
    offs_ref[...] = offs + jnp.sum(lab, axis=1, keepdims=True)


def scribble_pooling(feats, label, num_objects, max_len, no,
                     *, hw_chunk=None, c_chunk=None):
    """feats: [B, C, H, W]; label: [B, K, H, W] (0/1); num_objects: [B].

    NOTE: exactness of the in-kernel max-over-slots selection relies on label
    slots being mutually exclusive per pixel (true for one-hot class maps).
    """
    B, C, H, W = feats.shape
    HW = H * W
    n_slots = no + 1
    m_rows = n_slots * max_len
    feat_bytes = jnp.dtype(feats.dtype).itemsize

    # Native layout: metadata-only reshape to [B, C, HW] (no HBM transpose).
    feats_flat = feats.reshape(B, C, HW)

    # Object channels 1..no in order, then background (= last label channel).
    sel_lab = jnp.concatenate([label[:, 1:no + 1], label[:, -1:]], axis=1)
    sel_lab = (sel_lab.reshape(B, n_slots, HW) > 0.5).astype(jnp.int32)

    # Zero label rows of skipped objects (o > num_objects[b]); background slot
    # is always valid.  Removes any per-slot guard from the kernel.
    slot_ids = jnp.arange(n_slots, dtype=jnp.int32)
    valid = jnp.logical_or(
        slot_ids[None, :] < num_objects.astype(jnp.int32)[:, None],
        slot_ids[None, :] == no)                                  # [B, n_slots]
    sel_lab = sel_lab * valid[:, :, None].astype(jnp.int32)

    # Padding masks from per-slot pixel counts (cheap XLA reduce; the kernel
    # only emits the lane-dense pooled-feature slab).
    counts = jnp.sum(sel_lab, axis=-1)                            # [B, n_slots]
    filled = jnp.minimum(counts, max_len)
    j = jnp.arange(max_len, dtype=jnp.int32)
    mask_all = (j[None, None, :] >= filled[:, :, None]).astype(jnp.float32)

    # Lane-dense output: pad C up to 128 if needed (padded channels sliced off).
    if C < 128:
        feats_flat = jnp.pad(feats_flat, ((0, 0), (0, 128 - C), (0, 0)))
        C_k = 128
    else:
        C_k = C

    # Keep the lane (HW) axis 128-aligned; padded positions are never selected.
    hw_pad = (-HW) % 128
    if hw_pad:
        sel_lab = jnp.pad(sel_lab, ((0, 0), (0, 0), (0, hw_pad)))
        feats_flat = jnp.pad(feats_flat, ((0, 0), (0, 0), (0, hw_pad)))
    HWp = HW + hw_pad

    # ---- HW chunking: keep the double-buffered feat stream around <= 8 MiB --
    if hw_chunk is None:
        budget = 8 * 2**20
        hw_chunk = max(512, (budget // (2 * max(C_k, 1) * feat_bytes)))
    hw_chunk = min(hw_chunk, HWp)
    hw_chunk = max(128, (hw_chunk // 128) * 128)
    extra = (-HWp) % hw_chunk                     # make hw_chunk tile HWp evenly
    if extra:
        sel_lab = jnp.pad(sel_lab, ((0, 0), (0, 0), (0, extra)))
        feats_flat = jnp.pad(feats_flat, ((0, 0), (0, 0), (0, extra)))
        HWp += extra
    n_k = HWp // hw_chunk

    # ---- optional C split: feed both v7x TensorCores when B == 1 -----------
    if c_chunk is None:
        c_chunk = C_k
        if B < 2 and C_k % 256 == 0:
            c_chunk = C_k // 2
    assert C_k % c_chunk == 0
    n_c = C_k // c_chunk

    # Explicit scoped-VMEM limit (v5e default is only 16 MiB; v7x has 64 MiB
    # physical, so cap well below it).
    est = (2 * n_slots * hw_chunk * 4                 # label double-buffer
           + 2 * c_chunk * hw_chunk * feat_bytes      # feat double-buffer
           + 2 * m_rows * c_chunk * 4                 # resident output block
           + 3 * m_rows * hw_chunk * 4                # sel + iota temps
           + 6 * n_slots * hw_chunk * 4)              # scan temps
    vmem_limit = int(min(56 * 2**20, max(24 * 2**20, 2 * est)))

    src_all = pl.pallas_call(
        functools.partial(_scribble_pool_kernel, max_len=max_len),
        out_shape=jax.ShapeDtypeStruct((B, m_rows, C_k), jnp.float32),
        grid_spec=pltpu.PrefetchScalarGridSpec(
            num_scalar_prefetch=0,
            grid=(B, n_c, n_k),
            in_specs=[
                pl.BlockSpec((1, n_slots, hw_chunk), lambda b, c, k: (b, 0, k)),
                pl.BlockSpec((1, c_chunk, hw_chunk), lambda b, c, k: (b, c, k)),
            ],
            out_specs=pl.BlockSpec((1, m_rows, c_chunk), lambda b, c, k: (b, 0, c)),
            scratch_shapes=[pltpu.VMEM((n_slots, 1), jnp.int32)],
        ),
        compiler_params=pltpu.CompilerParams(
            dimension_semantics=("parallel", "parallel", "arbitrary"),
            vmem_limit_bytes=vmem_limit),
    )(sel_lab, feats_flat)

    src_all = src_all[..., :C].reshape(B, n_slots, max_len, C)

    src_obj, src_bg = src_all[:, :no], src_all[:, no]
    mask_obj, mask_bg = mask_all[:, :no], mask_all[:, no]

    # "other": for each object o -> all other objects (in order) then background.
    idx = np.stack([np.array([k for k in range(no) if k != o] + [no],
                             dtype=np.int32) for o in range(no)])   # (no, no)
    src_other = src_all[:, idx].reshape(B * no, no * max_len, C)
    mask_other = mask_all[:, idx].reshape(B * no, no * max_len)

    obj = {'src': src_obj.reshape(B * no, max_len, C),
           'mask': mask_obj.reshape(B * no, max_len)}
    bg = {'src': src_bg, 'mask': mask_bg}
    other = {'src': src_other, 'mask': mask_other}
    return obj, bg, other


def reference_forward(feats, label, num_objects, max_len):
    """Pure-numpy mirror of the PyTorch forward (deterministic truncation)."""
    B, C, H, W = feats.shape
    no = int(num_objects.max())
    src_obj = np.zeros((B, no, max_len, C), np.float32)
    mask_obj = np.ones((B, no, max_len), np.float32)
    src_bg = np.zeros((B, max_len, C), np.float32)
    mask_bg = np.ones((B, max_len), np.float32)
    feats_flat = feats.reshape(B, C, H * W)
    lab_flat = label.reshape(B, -1, H * W)
    for b in range(B):
        for o in range(1, no + 1):
            if o > num_objects[b]:
                continue
            pos = np.where(lab_flat[b, o] == 1)[0]
            ext = feats_flat[b][:, pos].T
            L = min(len(pos), max_len)
            src_obj[b, o - 1, :L] = ext[:L]
            mask_obj[b, o - 1, :L] = 0
        pos = np.where(lab_flat[b, -1] == 1)[0]
        ext = feats_flat[b][:, pos].T
        L = min(len(pos), max_len)
        src_bg[b, :L] = ext[:L]
        mask_bg[b, :L] = 0
    src_other = np.zeros((B, no, max_len * no, C), np.float32)
    mask_other = np.ones((B, no, max_len * no), np.float32)
    for b in range(B):
        for o in range(no):
            of = np.concatenate([src_obj[b, 0:o], src_obj[b, o + 1:],
                                 src_bg[b:b + 1]], axis=0).reshape(-1, C)
            om = np.concatenate([mask_obj[b, 0:o], mask_obj[b, o + 1:],
                                 mask_bg[b:b + 1]], axis=0).reshape(-1)
            src_other[b, o] = of
            mask_other[b, o] = om
    obj = {'src': src_obj.reshape(B * no, max_len, C),
           'mask': mask_obj.reshape(B * no, max_len)}
    bg = {'src': src_bg, 'mask': mask_bg}
    other = {'src': src_other.reshape(B * no, max_len * no, C),
             'mask': mask_other.reshape(B * no, max_len * no)}
    return obj, bg, other


def _check(out, ref):
    obj, bg, other = out
    robj, rbg, rother = ref
    assert np.allclose(np.asarray(obj['src']), robj['src'], atol=1e-5)
    assert np.allclose(np.asarray(obj['mask']), robj['mask'], atol=1e-5)
    assert np.allclose(np.asarray(bg['src']), rbg['src'], atol=1e-5)
    assert np.allclose(np.asarray(bg['mask']), rbg['mask'], atol=1e-5)
    assert np.allclose(np.asarray(other['src']), rother['src'], atol=1e-5)
    assert np.allclose(np.asarray(other['mask']), rother['mask'], atol=1e-5)


if __name__ == "__main__":
    key = jax.random.PRNGKey(0)
    B, C, H, W = 2, 128, 16, 16
    max_len = 8
    num_objects_list = [2, 1]
    no = max(num_objects_list)
    K = no + 2   # channel 0 unused, channels 1..no = objects, last = background

    kf, kl = jax.random.split(key)
    feats = jax.random.normal(kf, (B, C, H, W), dtype=jnp.float32)
    classes = jax.random.randint(kl, (B, H, W), 0, K)
    label = jnp.transpose(jax.nn.one_hot(classes, K, dtype=jnp.float32),
                          (0, 3, 1, 2))                     # [B, K, H, W]
    num_objects = jnp.array(num_objects_list, dtype=jnp.int32)

    # TODO(synk): PyTorch uses random.sample when a scribble has > max_len
    # pixels; here we deterministically keep the first max_len positions.
    ref = reference_forward(np.asarray(feats), np.asarray(label),
                            np.array(num_objects_list), max_len)

    # Default chunking (single HW chunk at this size).
    out = scribble_pooling(feats, label, num_objects, max_len, no)
    jax.block_until_ready(out[0]['src'])
    jax.block_until_ready(out[2]['src'])
    _check(out, ref)

    # Forced multi-chunk path (hw_chunk=128 -> 2 chunks) exercising the
    # cross-chunk rank carry and the resident-output accumulation.
    out2 = scribble_pooling(feats, label, num_objects, max_len, no, hw_chunk=128)
    jax.block_until_ready(out2[0]['src'])
    jax.block_until_ready(out2[2]['src'])
    _check(out2, ref)

    print("KERNEL_OK")
</pallas_src>

<mosaic_0001>
module attributes {stable_mosaic.version = 11 : i64} {
  func.func @_scribble_pool_kernel(%arg0: i32, %arg1: i32, %arg2: i32, %arg3: memref<1x3x256xi32, #tpu.memory_space<vmem>>, %arg4: memref<1x128x256xf32, #tpu.memory_space<vmem>>, %arg5: memref<1x24x128xf32, #tpu.memory_space<vmem>>, %arg6: memref<3x1xi32, #tpu.memory_space<vmem>>) attributes {dimension_semantics = [#tpu.dimension_semantics<parallel>, #tpu.dimension_semantics<parallel>, #tpu.dimension_semantics<arbitrary>], iteration_bounds = array<i64: 2, 1, 1>, scalar_prefetch = 0 : i64, scratch_operands = 1 : i64, tpu.core_type = #tpu.core_type<tc>, window_params = [{transform_indices = @transform_0, window_bounds = array<i64: 1, 3, 256>}, {transform_indices = @transform_1, window_bounds = array<i64: 1, 128, 256>}, {transform_indices = @transform_2, window_bounds = array<i64: 1, 24, 128>}]} {
    %c0_i32 = arith.constant 0 : i32
    %0 = arith.cmpi eq, %arg2, %c0_i32 : i32
    %1 = arith.extui %0 : i1 to i32
    %c0_i32_0 = arith.constant 0 : i32
    %2 = arith.cmpi ne, %1, %c0_i32_0 : i32
    scf.if %2 {
      %c0_i32_38 = arith.constant 0 : i32
      %90 = vector.broadcast %c0_i32_38 : i32 to vector<3x1xi32>
      %c0_39 = arith.constant 0 : index
      %c0_40 = arith.constant 0 : index
      %91 = vector.load %arg6[%c0_39, %c0_40] : memref<3x1xi32, #tpu.memory_space<vmem>>, vector<3x1xi32>
      tpu.vector_store %arg6[%c0_39, %c0_40], %90 {strides = array<i32>} : memref<3x1xi32, #tpu.memory_space<vmem>>, vector<3x1xi32>,
      %cst_41 = arith.constant 0.000000e+00 : f32
      %92 = vector.broadcast %cst_41 : f32 to vector<1x24x128xf32>
      %c0_42 = arith.constant 0 : index
      %c0_43 = arith.constant 0 : index
      %c0_44 = arith.constant 0 : index
      %93 = vector.load %arg5[%c0_42, %c0_43, %c0_44] : memref<1x24x128xf32, #tpu.memory_space<vmem>>, vector<1x24x128xf32>
      tpu.vector_store %arg5[%c0_42, %c0_43, %c0_44], %92 {strides = array<i32>} : memref<1x24x128xf32, #tpu.memory_space<vmem>>, vector<1x24x128xf32>,
    } else {
    }
    %c0 = arith.constant 0 : index
    %c0_1 = arith.constant 0 : index
    %c0_2 = arith.constant 0 : index
    %3 = vector.load %arg3[%c0, %c0_1, %c0_2] : memref<1x3x256xi32, #tpu.memory_space<vmem>>, vector<1x3x256xi32>
    %4 = vector.shape_cast %3 : vector<1x3x256xi32> to vector<3x256xi32>
    %c0_3 = arith.constant 0 : index
    %c0_4 = arith.constant 0 : index
    %c0_5 = arith.constant 0 : index
    %5 = vector.load %arg4[%c0_3, %c0_4, %c0_5] : memref<1x128x256xf32, #tpu.memory_space<vmem>>, vector<1x128x256xf32>
    %6 = vector.shape_cast %5 : vector<1x128x256xf32> to vector<128x256xf32>
    %7 = tpu.iota {dimensions = array<i32: 1>} : vector<3x256xi32>
    %c1_i32 = arith.constant 1 : i32
    %8 = tpu.dynamic_rotate %4 by %c1_i32 dim 1 : vector<3x256xi32>, i32 -> vector<3x256xi32>
    %c1_i32_6 = arith.constant 1 : i32
    %9 = vector.broadcast %c1_i32_6 : i32 to vector<3x256xi32>
    %10 = arith.cmpi sge, %7, %9 : vector<3x256xi32>
    %c0_i32_7 = arith.constant 0 : i32
    %11 = vector.broadcast %c0_i32_7 : i32 to vector<3x256xi32>
    %12 = arith.select %10, %8, %11 : vector<3x256xi1>, vector<3x256xi32>
    %13 = arith.addi %4, %12 : vector<3x256xi32>
    %c2_i32 = arith.constant 2 : i32
    %14 = tpu.dynamic_rotate %13 by %c2_i32 dim 1 : vector<3x256xi32>, i32 -> vector<3x256xi32>
    %c2_i32_8 = arith.constant 2 : i32
    %15 = vector.broadcast %c2_i32_8 : i32 to vector<3x256xi32>
    %16 = arith.cmpi sge, %7, %15 : vector<3x256xi32>
    %c0_i32_9 = arith.constant 0 : i32
    %17 = vector.broadcast %c0_i32_9 : i32 to vector<3x256xi32>
    %18 = arith.select %16, %14, %17 : vector<3x256xi1>, vector<3x256xi32>
    %19 = arith.addi %13, %18 : vector<3x256xi32>
    %c4_i32 = arith.constant 4 : i32
    %20 = tpu.dynamic_rotate %19 by %c4_i32 dim 1 : vector<3x256xi32>, i32 -> vector<3x256xi32>
    %c4_i32_10 = arith.constant 4 : i32
    %21 = vector.broadcast %c4_i32_10 : i32 to vector<3x256xi32>
    %22 = arith.cmpi sge, %7, %21 : vector<3x256xi32>
    %c0_i32_11 = arith.constant 0 : i32
    %23 = vector.broadcast %c0_i32_11 : i32 to vector<3x256xi32>
    %24 = arith.select %22, %20, %23 : vector<3x256xi1>, vector<3x256xi32>
    %25 = arith.addi %19, %24 : vector<3x256xi32>
    %c8_i32 = arith.constant 8 : i32
    %26 = tpu.dynamic_rotate %25 by %c8_i32 dim 1 : vector<3x256xi32>, i32 -> vector<3x256xi32>
    %c8_i32_12 = arith.constant 8 : i32
    %27 = vector.broadcast %c8_i32_12 : i32 to vector<3x256xi32>
    %28 = arith.cmpi sge, %7, %27 : vector<3x256xi32>
    %c0_i32_13 = arith.constant 0 : i32
    %29 = vector.broadcast %c0_i32_13 : i32 to vector<3x256xi32>
    %30 = arith.select %28, %26, %29 : vector<3x256xi1>, vector<3x256xi32>
    %31 = arith.addi %25, %30 : vector<3x256xi32>
    %c16_i32 = arith.constant 16 : i32
    %32 = tpu.dynamic_rotate %31 by %c16_i32 dim 1 : vector<3x256xi32>, i32 -> vector<3x256xi32>
    %c16_i32_14 = arith.constant 16 : i32
    %33 = vector.broadcast %c16_i32_14 : i32 to vector<3x256xi32>
    %34 = arith.cmpi sge, %7, %33 : vector<3x256xi32>
    %c0_i32_15 = arith.constant 0 : i32
    %35 = vector.broadcast %c0_i32_15 : i32 to vector<3x256xi32>
    %36 = arith.select %34, %32, %35 : vector<3x256xi1>, vector<3x256xi32>
    %37 = arith.addi %31, %36 : vector<3x256xi32>
    %c32_i32 = arith.constant 32 : i32
    %38 = tpu.dynamic_rotate %37 by %c32_i32 dim 1 : vector<3x256xi32>, i32 -> vector<3x256xi32>
    %c32_i32_16 = arith.constant 32 : i32
    %39 = vector.broadcast %c32_i32_16 : i32 to vector<3x256xi32>
    %40 = arith.cmpi sge, %7, %39 : vector<3x256xi32>
    %c0_i32_17 = arith.constant 0 : i32
    %41 = vector.broadcast %c0_i32_17 : i32 to vector<3x256xi32>
    %42 = arith.select %40, %38, %41 : vector<3x256xi1>, vector<3x256xi32>
    %43 = arith.addi %37, %42 : vector<3x256xi32>
    %c64_i32 = arith.constant 64 : i32
    %44 = tpu.dynamic_rotate %43 by %c64_i32 dim 1 : vector<3x256xi32>, i32 -> vector<3x256xi32>
    %c64_i32_18 = arith.constant 64 : i32
    %45 = vector.broadcast %c64_i32_18 : i32 to vector<3x256xi32>
    %46 = arith.cmpi sge, %7, %45 : vector<3x256xi32>
    %c0_i32_19 = arith.constant 0 : i32
    %47 = vector.broadcast %c0_i32_19 : i32 to vector<3x256xi32>
    %48 = arith.select %46, %44, %47 : vector<3x256xi1>, vector<3x256xi32>
    %49 = arith.addi %43, %48 : vector<3x256xi32>
    %c128_i32 = arith.constant 128 : i32
    %50 = tpu.dynamic_rotate %49 by %c128_i32 dim 1 : vector<3x256xi32>, i32 -> vector<3x256xi32>
    %c128_i32_20 = arith.constant 128 : i32
    %51 = vector.broadcast %c128_i32_20 : i32 to vector<3x256xi32>
    %52 = arith.cmpi sge, %7, %51 : vector<3x256xi32>
    %c0_i32_21 = arith.constant 0 : i32
    %53 = vector.broadcast %c0_i32_21 : i32 to vector<3x256xi32>
    %54 = arith.select %52, %50, %53 : vector<3x256xi1>, vector<3x256xi32>
    %55 = arith.addi %49, %54 : vector<3x256xi32>
    %c0_22 = arith.constant 0 : index
    %c0_23 = arith.constant 0 : index
    %56 = vector.load %arg6[%c0_22, %c0_23] : memref<3x1xi32, #tpu.memory_space<vmem>>, vector<3x1xi32>
    %c1_i32_24 = arith.constant 1 : i32
    %57 = vector.broadcast %c1_i32_24 : i32 to vector<3x256xi32>
    %58 = arith.subi %55, %57 : vector<3x256xi32>
    %59 = vector.broadcast %56 : vector<3x1xi32> to vector<3x256xi32>
    %60 = arith.addi %58, %59 : vector<3x256xi32>
    %61 = tpu.iota {dimensions = array<i32: 0>} : vector<3x256xi32>
    %c1_i32_25 = arith.constant 1 : i32
    %62 = vector.broadcast %c1_i32_25 : i32 to vector<3x256xi32>
    %63 = arith.cmpi eq, %4, %62 : vector<3x256xi32>
    %c8_i32_26 = arith.constant 8 : i32
    %64 = vector.broadcast %c8_i32_26 : i32 to vector<3x256xi32>
    %65 = arith.cmpi slt, %60, %64 : vector<3x256xi32>
    %66 = arith.andi %63, %65 : vector<3x256xi1>
    %c8_i32_27 = arith.constant 8 : i32
    %67 = vector.broadcast %c8_i32_27 : i32 to vector<3x256xi32>
    %68 = arith.muli %61, %67 : vector<3x256xi32>
    %69 = arith.addi %68, %60 : vector<3x256xi32>
    %c-1_i32 = arith.constant -1 : i32
    %70 = vector.broadcast %c-1_i32 : i32 to vector<3x256xi32>
    %71 = arith.select %66, %69, %70 : vector<3x256xi1>, vector<3x256xi32>
    %cst = arith.constant dense<-2147483648> : vector<256xi32>
    %72 = vector.multi_reduction <maxsi>, %71, %cst [0] : vector<3x256xi32> to vector<256xi32>
    %73 = vector.shape_cast %72 : vector<256xi32> to vector<1x256xi32>
    %74 = tpu.iota {dimensions = array<i32: 0>} : vector<24x256xi32>
    %75 = vector.broadcast %73 : vector<1x256xi32> to vector<24x256xi32>
    %76 = arith.cmpi eq, %74, %75 : vector<24x256xi32>
    %77 = arith.extui %76 : vector<24x256xi1> to vector<24x256xi32>
    %78 = arith.sitofp %77 : vector<24x256xi32> to vector<24x256xf32>
    %cst_28 = arith.constant dense<0.000000e+00> : vector<24x128xf32>
    %79 = tpu.matmul %78, %6, %cst_28 {dimension_numbers = #tpu.dot_dimension_numbers<[1], [1], [0], [0], [0, 0, 1, 0], [], []>} : vector<24x256xf32>, vector<128x256xf32>, vector<24x128xf32> -> vector<24x128xf32>
    %c0_29 = arith.constant 0 : index
    %c0_30 = arith.constant 0 : index
    %c0_31 = arith.constant 0 : index
    %80 = vector.load %arg5[%c0_29, %c0_30, %c0_31] : memref<1x24x128xf32, #tpu.memory_space<vmem>>, vector<1x24x128xf32>
    %81 = vector.shape_cast %80 : vector<1x24x128xf32> to vector<24x128xf32>
    %82 = arith.addf %81, %79 : vector<24x128xf32>
    %c0_32 = arith.constant 0 : index
    %c0_33 = arith.constant 0 : index
    %c0_34 = arith.constant 0 : index
    %83 = vector.load %arg5[%c0_32, %c0_33, %c0_34] : memref<1x24x128xf32, #tpu.memory_space<vmem>>, vector<1x24x128xf32>
    %84 = vector.shape_cast %83 : vector<1x24x128xf32> to vector<24x128xf32>
    %85 = vector.shape_cast %82 : vector<24x128xf32> to vector<1x24x128xf32>
    tpu.vector_store %arg5[%c0_32, %c0_33, %c0_34], %85 {strides = array<i32>} : memref<1x24x128xf32, #tpu.memory_space<vmem>>, vector<1x24x128xf32>,
    %cst_35 = arith.constant dense<0> : vector<3xi32>
    %86 = vector.multi_reduction <add>, %4, %cst_35 [1] : vector<3x256xi32> to vector<3xi32>
    %87 = vector.shape_cast %86 : vector<3xi32> to vector<3x1xi32>
    %88 = arith.addi %56, %87 : vector<3x1xi32>
    %c0_36 = arith.constant 0 : index
    %c0_37 = arith.constant 0 : index
    %89 = vector.load %arg6[%c0_36, %c0_37] : memref<3x1xi32, #tpu.memory_space<vmem>>, vector<3x1xi32>
    tpu.vector_store %arg6[%c0_36, %c0_37], %88 {strides = array<i32>} : memref<3x1xi32, #tpu.memory_space<vmem>>, vector<3x1xi32>,
    return
  }
  func.func @transform_0(%arg0: i32, %arg1: i32, %arg2: i32) -> (i32, i32, i32) {
    %c0_i32 = arith.constant 0 : i32
    %c0_i32_0 = arith.constant 0 : i32
    return %arg0, %c0_i32, %arg2 : i32, i32, i32
  }
  func.func @transform_1(%arg0: i32, %arg1: i32, %arg2: i32) -> (i32, i32, i32) {
    %c0_i32 = arith.constant 0 : i32
    return %arg0, %arg1, %arg2 : i32, i32, i32
  }
  func.func @transform_2(%arg0: i32, %arg1: i32, %arg2: i32) -> (i32, i32, i32) {
    %c0_i32 = arith.constant 0 : i32
    %c0_i32_0 = arith.constant 0 : i32
    return %arg0, %c0_i32, %arg1 : i32, i32, i32
  }
}

</mosaic_0001>

<bundles_post_ra>
// kernel: tpu_custom_call.1
= control target key start
LH: loop header
LB: loop body
LE: loop exit
PB: predicated region body
PF: predicated region fallthrough
CT: control target
= control target key end

     0   :  { %7 = vsyncpa [#allocation4], 0  ;;  %s1202_s0 = inlined_call_operand.vmem [shape: s32[2,3,256], index: 0, kind: input, shape index: {}]   ;;  %s1203_s1 = inlined_call_operand.hbm [shape: f32[2,128,256], index: 1, kind: input, shape index: {}]   ;;  %s1204_s2 = inlined_call_operand.hbm [shape: f32[2,24,128], index: 2, kind: output, shape index: {}]  }
   0x1   :  { %9 = vsyncpa [#allocation4 + $0x1], 0 }
   0x2   :  { %10 = vsyncpa [#allocation5], 0 }
   0x3   :  { %12 = vsyncpa [#allocation5 + $0x1], 0  ;;  %s958_s9 = smov 0   ;;  %s960_s10 = smov 0  }
   0x4   :  { %s962_s11 = smov 0   ;;  %s964_s12 = smov 0  }
   0x5   :  { %s966_s13 = smov 0   ;;  %s968_s14 = smov 0  }
   0x6 LB: > { %s677_s15 = sadd.s32 4294967295, %s926_s14   ;;  %s678_s16 = sadd.s32 4294967294, %s926_s14   ;;  %s926_s14 = sphi %s968_s14, %s18_s14   ;;  %s922_s13 = sphi %s966_s13, %s1215_s13   ;;  %s918_s12 = sphi %s964_s12, %s1214_s12   ;;  %s914_s11 = sphi %s962_s11, %s1213_s11   ;;  %s910_s10 = sphi %s960_s10, %s1212_s10   ;;  %s906_s9 = sphi %s958_s9, %s1211_s9  }
   0x7   : > { %s37_s17 = sadd.s32 1, %s922_s13  ;;  %s76_s18 = sadd.s32 1, %s914_s11 }
   0x8   : > { %p39_p0 = scmp.ge.s32.totalorder %s37_s17, 2  ;;  %p83_p1 = scmp.ne.s32.totalorder %s914_s11, %s910_s10 }
   0x9   : > { %p84_p2 = scmp.eq.s32.totalorder %s926_s14, 0  ;;  %p89_p3 = scmp.ne.s32.totalorder %s910_s10, %s906_s9 }
   0xa   : > { %s1217_s17 = smov (%p39_p0, %s37_s17), 0  ;;  %p90_p5 = scmp.eq.s32.totalorder %s677_s15, 0 }
   0xb   : > { %p999_p4 = por %p84_p2, %p83_p1  ;;  %s69_s20 = ssub.s32 %s922_s13, %s1217_s17 }
   0xc   : > { %p115_p6 = scmp.eq.s32.totalorder %s677_s15, 1  ;;  %p74_p7 = scmp.eq.s32.totalorder %s69_s20, 0 }
   0xd   : > { %p1005_p8 = por %p90_p5, %p89_p3  ;;  %p121_p10 = scmp.eq.s32.totalorder %s678_s16, 1 }
   0xe   : > { %p1009_p9 = por %p115_p6, %p83_p1  ;;  %p752_p13 = scmp.lt.s32.totalorder %s926_s14, 2 }
   0xf   : > { %s1014_s23 = scalar_select %p74_p7, %s914_s11, %s76_s18  }
  0x10   : > { %p1016_p11 = por %p121_p10, %p89_p3  ;;  %s154_s25 = sand.u32 1, %s914_s11  }
  0x11   : > { %s681_s26 = sshll.u32 %s154_s25, 8  ;;  %s704_s27 = sshll.u32 %s922_s13, 12 }
  0x12   : > { %s169_s30 = scalar_lea.hbm %s1203_s1, %s704_s27  ;;  %s158_s3 = scalar_lea.vmem [#allocation3], %s681_s26 }
  0x13   : > { %s170_s4 = sshll.u32 %s158_s3, 4  ;;  %p1029_p0 = pnand %p752_p13, %p999_p4  ;;  %s171_s4 = int_to_ptr.vmem [resolvable:$true] %s170_s4 }
  0x14   : > { %p684_p1 = scmp.ge.s32.totalorder %s926_s14, 1  ;;  %s155_s6 = scalar_lea.sflag [#allocation4], %s154_s25 }
  0x15   : > { %p820_p2 = pneg %p1029_p0  ;;  %s831_s7 = scalar_lea.vmem %s171_s4, 4096 }
  0x16   : > { %p832_p3 = scmp.ne.s32.totalorder %s171_s4, %s831_s7  ;;  %s928_s8 = smov [#allocation3]  }
  0x17   : > { %s836_s15 = sshll.u32 %s928_s8, 4  ;;  %s837_s15 = int_to_ptr.vmem [resolvable:$false] %s836_s15 }
  0x18   : > { %p834_p5 = pnand %p832_p3, %p820_p2  ;;  %s838_s16 = scalar_lea.vmem %s837_s15, 8192 }
  0x19   : > { %p839_p7 = scmp.lt.s32.totalorder %s171_s4, %s837_s15  ;;  %p840_p10 = scmp.lt.s32.totalorder %s838_s16, %s831_s7 }
  0x1a   : > { %p835_p6 = pneg %p834_p5 }
  0x1b   : > { %p841_p12 = por %p840_p10, %p839_p7 }
  0x1d   : > { %p842_p4 = pnand %p841_p12, %p835_p6 }
  0x1f   : > { %845 = shalt.err (!%p842_p4)
}
  0x20   : > { %s929_s18 = smov 256   ;;  %s930_s19 = smov 16  }
  0x21   : > { %747 = dma.hbm_to_vmem [thread:$0]  (!%p1029_p0), %s169_s30, 4096, %s171_s4, %s155_s6, %s929_s18, %s929_s18, %s930_s19  }
  0x22   : > { %p178_p13 = scmp.lt.s32.totalorder %s926_s14, 3 }
  0x24   : > { %p179_p2 = pnand %p684_p1, %p178_p13 }
  0x25   : > { %s1042_s20 = sand.u32 (!%p179_p2), 1, %s910_s10  }
  0x26   : > { %182 = sbr.rel (%p179_p2) target bundleno = 1161 (0x489), region = 28  ;;  %s685_s25 = sshll.u32 (!%p179_p2), %s1042_s20, 8 }
  0x27   : > { %s185_s26 = scalar_lea.sflag (!%p179_p2), [#allocation4], %s1042_s20  ;;  %s1046_s27 = scalar_lea.vmem (!%p179_p2), [#allocation3], %s685_s25 }
  0x2b   : > { %897 = dma.done.wait (%p1005_p8), %s185_s26, 4096  }
  0x2c   : > { %899 = vsyncadd (%p1005_p8), %s185_s26, 4294963200  ;;  %p219_p12 = scmp.lt.s32.totalorder %s918_s12, 1  ;;  %s931_s5 = smov 1   ;;  %v272_v2 = vlaneseq  ;;  %vm234_vm8 = vcmask 2048   ;;  %v936_v36 = vmov 0   ;;  %v271_v44 = vld [vmem:[%s1046_s27 + $0xf8] sm:$0xff] }
  0x2d   : > { %s932_s21 = smov 2   ;;  %s933_s6 = smov 4   ;;  %816 = vset.pattern.permute.xlu0 %v936_v36  ;;  %235 = vst.msk [vmem:[#allocation2] sm:$0x7] %vm234_vm8, %v936_v36  ;;  %v270_v45 = vld [vmem:[%s1046_s27 + $0xf0] sm:$0xff]  ;;  %446 = vmatprep.subr.mxu0 %v271_v44  ;;  %v269_v47 = vld [vmem:[%s1046_s27 + $0xe8] sm:$0xff] }
  0x2e   : > { %s220_s28 = scalar_select %p219_p12, %s918_s12, 1  ;;  %v1066_v3 = vand.u32 127, %v272_v2  ;;  %706 = vmatprep.subr.mxu1 %v271_v44  ;;  %447 = vmatpush1.xpose.msra.mxu0 %v270_v45  ;;  %v268_v48 = vld [vmem:[%s1046_s27 + $0xe0] sm:$0xff]  ;;  %v267_v49 = vld [vmem:[%s1046_s27 + $0xd8] sm:$0xff]  ;;  %v266_v50 = vld [vmem:[%s1046_s27 + $0xd0] sm:$0xff]  ;;  %vm405_vm13 = vcmask 1042432  }
  0x2f   : > { %s934_s7 = smov 8   ;;  %s935_s8 = smov 16   ;;  %722 = vmatpush1.xpose.msra.mxu1 %v270_v45  ;;  %448 = vmatprep.subr.mxu0 %v269_v47  ;;  %v265_v51 = vld [vmem:[%s1046_s27 + $0xc8] sm:$0xff]  ;;  %v264_v52 = vld [vmem:[%s1046_s27 + $0xc0] sm:$0xff]  ;;  %v263_v53 = vld [vmem:[%s1046_s27 + $0xb8] sm:$0xff] }
  0x30   : > { %s705_s29 = sshll.u32 %s220_s28, 3  ;;  %vm280_vm0 = vcmp.lt.s32.totalorder %v1066_v3, 1  ;;  %vm283_vm1 = vcmp.ge.s32.totalorder %v1066_v3, 1  ;;  %vm294_vm2 = vcmp.lt.s32.totalorder %v1066_v3, 2  ;;  %vm297_vm3 = vcmp.ge.s32.totalorder %v1066_v3, 2  ;;  %s937_s15 = smov 32   ;;  %707 = vmatprep.subr.mxu1 %v269_v47 }
  0x31   : > { %s226_s4 = scalar_lea.vmem %s1202_s0, %s705_s29  ;;  %vm308_vm4 = vcmp.lt.s32.totalorder %v1066_v3, 4  ;;  %vm311_vm5 = vcmp.ge.s32.totalorder %v1066_v3, 4  ;;  %vm322_vm6 = vcmp.lt.s32.totalorder %v1066_v3, 8  ;;  %vm325_vm7 = vcmp.ge.s32.totalorder %v1066_v3, 8  ;;  %v262_v54 = vld [vmem:[%s1046_s27 + $0xb0] sm:$0xff]  ;;  %v261_v55 = vld [vmem:[%s1046_s27 + $0xa8] sm:$0xff] }
  0x32   : > { %v1057_v0 = vld [vmem:[%s226_s4] sm:$0x77]  ;;  %vm336_vm9 = vcmp.lt.s32.totalorder %v1066_v3, 16  ;;  %vm339_vm10 = vcmp.ge.s32.totalorder %v1066_v3, 16  ;;  %449 = vmatpush1.xpose.msra.mxu0 %v268_v48  ;;  %v258_v58 = vld [vmem:[%s1046_s27 + $0x90] sm:$0xff]  ;;  %vm350_vm11 = vcmp.lt.s32.totalorder %v1066_v3, 32 }
  0x33   : > { %276 = vrot.lane.b32.xlu0 %v1057_v0, %s931_s5  ;;  %v1062_v1 = vcombine.high %v1057_v0, %v1057_v0  ;;  %723 = vmatpush1.xpose.msra.mxu1 %v268_v48  ;;  %v260_v56 = vld [vmem:[%s1046_s27 + $0xa0] sm:$0xff]  ;;  %v259_v57 = vld [vmem:[%s1046_s27 + $0x98] sm:$0xff]  ;;  %v257_v59 = vld [vmem:[%s1046_s27 + $0x88] sm:$0xff]  ;;  %vm353_vm12 = vcmp.ge.s32.totalorder %v1066_v3, 32  ;;  %s938_s16 = smov 64   ;;  %vm364_vm14 = vcmp.lt.s32.totalorder %v1066_v3, 64 }
  0x34   : > { %450 = vmatprep.subr.mxu0 %v267_v49  ;;  %708 = vmatprep.subr.mxu1 %v267_v49  ;;  %v256_v60 = vld [vmem:[%s1046_s27 + $0x80] sm:$0xff]  ;;  %vm367_vm15 = vcmp.ge.s32.totalorder %v1066_v3, 64  ;;  %s738_s18 = smul.u32 24, %s1042_s20  ;;  %s941_s3 = smov [#allocation6]  }
  0x35   : > { %s739_s19 = smul.u32 384, %s918_s12  ;;  %s554_s12 = scalar_lea.sflag [#allocation5], %s1042_s20 }
  0x36   : > { %451 = vmatpush1.xpose.msra.mxu0 %v266_v50  ;;  %s217_s25 = scalar_lea.vmem [#allocation6], %s738_s18  ;;  %s850_s4 = sshll.u32 %s941_s3, 4  ;;  %s851_s4 = int_to_ptr.vmem [resolvable:$false] %s850_s4 }
  0x37   : > { %278 = vrot.lane.b32.xlu0 %v1062_v1, %s931_s5  ;;  %724 = vmatpush1.xpose.msra.mxu1 %v266_v50  ;;  %s568_s26 = sshll.u32 %s217_s25, 4  ;;  %s1151_s29 = scalar_lea.hbm %s1204_s2, %s739_s19  ;;  %s1153_s26 = int_to_ptr.vmem [resolvable:$true] %s568_s26 }
  0x38   : > { %452 = vmatprep.subr.mxu0 %v265_v51  ;;  %709 = vmatprep.subr.mxu1 %v265_v51  ;;  %s846_s30 = scalar_lea.vmem %s1153_s26, 384  ;;  %s852_s5 = scalar_lea.vmem %s851_s4, 768 }
  0x39   : > { %p847_p8 = scmp.ne.s32.totalorder %s1153_s26, %s846_s30  ;;  %p853_p3 = scmp.lt.s32.totalorder %s1153_s26, %s851_s4 }
  0x3a   : > { %453 = vmatpush1.xpose.msra.mxu0 %v264_v52  ;;  %p854_p5 = scmp.lt.s32.totalorder %s852_s5, %s846_s30 }
  0x3b   : > { %725 = vmatpush1.xpose.msra.mxu1 %v264_v52  ;;  %454 = vmatprep.subr.mxu0 %v263_v53  ;;  %p848_p0 = pnand %p847_p8, %p1009_p9 }
  0x3c   : > { %710 = vmatprep.subr.mxu1 %v263_v53  ;;  %p855_p6 = por %p854_p5, %p853_p3 }
  0x3d   : > { %p849_p1 = pneg %p848_p0 }
  0x3e   : > { %455 = vmatpush1.xpose.msra.mxu0 %v262_v54 }
  0x3f   : > { %726 = vmatpush1.xpose.msra.mxu1 %v262_v54  ;;  %456 = vmatprep.subr.mxu0 %v261_v55  ;;  %p856_p7 = pnand %p855_p6, %p849_p1 }
  0x40   : > { %711 = vmatprep.subr.mxu1 %v261_v55 }
  0x42   : > { %457 = vmatpush1.xpose.msra.mxu0 %v260_v56 }
  0x43   : > { %727 = vmatpush1.xpose.msra.mxu1 %v260_v56  ;;  %458 = vmatprep.subr.mxu0 %v259_v57 }
  0x44   : > { %712 = vmatprep.subr.mxu1 %v259_v57 }
  0x46   : > { %459 = vmatpush1.xpose.msra.mxu0 %v258_v58 }
  0x47   : > { %728 = vmatpush1.xpose.msra.mxu1 %v258_v58  ;;  %460 = vmatprep.subr.mxu0 %v257_v59 }
  0x48   : > { %713 = vmatprep.subr.mxu1 %v257_v59 }
  0x4a   : > { %461 = vmatpush1.xpose.msra.mxu0 %v256_v60 }
  0x4b   : > { %729 = vmatpush1.xpose.msra.mxu1 %v256_v60 }
  0xa5   : > { %v277_v4 = vpop.permute.xlu0 %276 }
  0xa9   : > { %v279_v5 = vpop.permute.xlu0 %278 }
  0xaa   : > { %v281_v6 = vsel %vm280_vm0, %v277_v4, %v279_v5  ;;  %v282_v7 = vsel %vm280_vm0, %v279_v5, %v277_v4  ;;  %vm395_vm0 = vcmp.eq.s32.totalorder %v1057_v0, 1 }
  0xab   : > { %v285_v8 = vsel %vm283_vm1, %v282_v7, 0  ;;  %v254_v7 = vld [vmem:[%s1046_s27 + $0x70] sm:$0xff] }
  0xac   : > { %v287_v9 = vcombine.low %v285_v8, %v281_v6  ;;  %v255_v6 = vld [vmem:[%s1046_s27 + $0x78] sm:$0xff] }
  0xad   : > { %462 = vmatprep.subr.mxu0 %v255_v6  ;;  %714 = vmatprep.subr.mxu1 %v255_v6 }
  0xae   : > { %v288_v10 = vadd.s32 %v287_v9, %v1057_v0  ;;  %463 = vmatpush1.xpose.msra.mxu0 %v254_v7  ;;  %730 = vmatpush1.xpose.msra.mxu1 %v254_v7 }
  0xb0   : > { %290 = vrot.lane.b32.xlu1 %v288_v10, %s932_s21  ;;  %v289_v11 = vcombine.high %v288_v10, %v288_v10 }
  0xb4   : > { %292 = vrot.lane.b32.xlu1 %v289_v11, %s932_s21 }
 0x122   : > { %v291_v12 = vpop.permute.xlu1 %290 }
 0x126   : > { %v293_v13 = vpop.permute.xlu1 %292 }
 0x127   : > { %v295_v14 = vsel %vm294_vm2, %v291_v12, %v293_v13  ;;  %v296_v15 = vsel %vm294_vm2, %v293_v13, %v291_v12  ;;  %v252_v12 = vld [vmem:[%s1046_s27 + $0x60] sm:$0xff]  ;;  %v1117_v13 = vld [vmem:[#allocation2] sm:$0x7] }
 0x128   : > { %v299_v16 = vsel %vm297_vm3, %v296_v15, 0  ;;  %v250_v15 = vld [vmem:[%s1046_s27 + $0x50] sm:$0xff] }
 0x129   : > { %v301_v17 = vcombine.low %v299_v16, %v295_v14  ;;  %v251_v14 = vld [vmem:[%s1046_s27 + $0x58] sm:$0xff]  ;;  %v249_v16 = vld [vmem:[%s1046_s27 + $0x48] sm:$0xff] }
 0x12b   : > { %v302_v18 = vadd.s32 %v301_v17, %v288_v10  ;;  %v253_v10 = vld [vmem:[%s1046_s27 + $0x68] sm:$0xff]  ;;  %v248_v17 = vld [vmem:[%s1046_s27 + $0x40] sm:$0xff] }
 0x12c   : > { %464 = vmatprep.subr.mxu0 %v253_v10  ;;  %715 = vmatprep.subr.mxu1 %v253_v10  ;;  %v940_v10 = vmov 1.0  }
 0x12d   : > { %304 = vrot.lane.b32.xlu0 %v302_v18, %s933_s6  ;;  %v303_v19 = vcombine.high %v302_v18, %v302_v18  ;;  %465 = vmatpush1.xpose.msra.mxu0 %v252_v12 }
 0x12e   : > { %731 = vmatpush1.xpose.msra.mxu1 %v252_v12  ;;  %466 = vmatprep.subr.mxu0 %v251_v14 }
 0x12f   : > { %306 = vrot.lane.b32.xlu1 %v303_v19, %s933_s6  ;;  %716 = vmatprep.subr.mxu1 %v251_v14  ;;  %v246_v19 = vld [vmem:[%s1046_s27 + $0x30] sm:$0xff] }
 0x131   : > { %467 = vmatpush1.xpose.msra.mxu0 %v250_v15 }
 0x132   : > { %732 = vmatpush1.xpose.msra.mxu1 %v250_v15  ;;  %468 = vmatprep.subr.mxu0 %v249_v16 }
 0x133   : > { %717 = vmatprep.subr.mxu1 %v249_v16 }
 0x135   : > { %469 = vmatpush1.xpose.msra.mxu0 %v248_v17 }
 0x136   : > { %733 = vmatpush1.xpose.msra.mxu1 %v248_v17 }
 0x19f   : > { %v305_v20 = vpop.permute.xlu0 %304 }
 0x1a1   : > { %v307_v21 = vpop.permute.xlu1 %306 }
 0x1a2   : > { %v309_v22 = vsel %vm308_vm4, %v305_v20, %v307_v21  ;;  %v310_v23 = vsel %vm308_vm4, %v307_v21, %v305_v20  ;;  %v245_v20 = vld [vmem:[%s1046_s27 + $0x28] sm:$0xff]  ;;  %v244_v21 = vld [vmem:[%s1046_s27 + $0x20] sm:$0xff] }
 0x1a3   : > { %v313_v24 = vsel %vm311_vm5, %v310_v23, 0  ;;  %v242_v23 = vld [vmem:[%s1046_s27 + $0x10] sm:$0xff] }
 0x1a4   : > { %v315_v25 = vcombine.low %v313_v24, %v309_v22  ;;  %v243_v22 = vld [vmem:[%s1046_s27 + $0x18] sm:$0xff]  ;;  %v241_v24 = vld [vmem:[%s1046_s27 + $0x8] sm:$0xff] }
 0x1a6   : > { %v316_v26 = vadd.s32 %v315_v25, %v302_v18  ;;  %v247_v18 = vld [vmem:[%s1046_s27 + $0x38] sm:$0xff]  ;;  %v240_v25 = vld [vmem:[%s1046_s27] sm:$0xff] }
 0x1a7   : > { %470 = vmatprep.subr.mxu0 %v247_v18  ;;  %718 = vmatprep.subr.mxu1 %v247_v18 }
 0x1a8   : > { %318 = vrot.lane.b32.xlu0 %v316_v26, %s934_s7  ;;  %v317_v27 = vcombine.high %v316_v26, %v316_v26  ;;  %471 = vmatpush1.xpose.msra.mxu0 %v246_v19 }
 0x1a9   : > { %734 = vmatpush1.xpose.msra.mxu1 %v246_v19  ;;  %472 = vmatprep.subr.mxu0 %v245_v20 }
 0x1aa   : > { %320 = vrot.lane.b32.xlu1 %v317_v27, %s934_s7  ;;  %719 = vmatprep.subr.mxu1 %v245_v20  ;;  %v536_v27 = vsel %vm405_vm13, %v1062_v1, 0 }
 0x1ac   : > { %473 = vmatpush1.xpose.msra.mxu0 %v244_v21 }
 0x1ad   : > { %735 = vmatpush1.xpose.msra.mxu1 %v244_v21  ;;  %474 = vmatprep.subr.mxu0 %v243_v22 }
 0x1ae   : > { %720 = vmatprep.subr.mxu1 %v243_v22 }
 0x1b0   : > { %475 = vmatpush1.xpose.msra.mxu0 %v242_v23 }
 0x1b1   : > { %736 = vmatpush1.xpose.msra.mxu1 %v242_v23  ;;  %476 = vmatprep.subr.mxu0 %v241_v24 }
 0x1b2   : > { %721 = vmatprep.subr.mxu1 %v241_v24 }
 0x1b4   : > { %477 = vmatpush1.xpose.msra.mxu0 %v240_v25 }
 0x1b5   : > { %737 = vmatpush1.xpose.msra.mxu1 %v240_v25 }
 0x21a   : > { %v319_v28 = vpop.permute.xlu0 %318 }
 0x21c   : > { %v321_v29 = vpop.permute.xlu1 %320 }
 0x21d   : > { %v323_v30 = vsel %vm322_vm6, %v319_v28, %v321_v29  ;;  %v324_v31 = vsel %vm322_vm6, %v321_v29, %v319_v28 }
 0x21e   : > { %v327_v32 = vsel %vm325_vm7, %v324_v31, 0 }
 0x21f   : > { %v329_v33 = vcombine.low %v327_v32, %v323_v30 }
 0x221   : > { %v330_v34 = vadd.s32 %v329_v33, %v316_v26  ;;  %v535_v26 = vsel %vm405_vm13, %v1057_v0, 0 }
 0x222   : > { %v537_v28 = vadd.s32 %v536_v27, %v535_v26 }
 0x223   : > { %332 = vrot.lane.b32.xlu0 %v330_v34, %s935_s8  ;;  %v331_v35 = vcombine.high %v330_v34, %v330_v34 }
 0x224   : > { %v539_v29 = vshrl.u32 %v537_v28, 16  ;;  %v538_v30 = vand.u32 65535, %v537_v28 }
 0x225   : > { %334 = vrot.lane.b32.xlu1 %v331_v35, %s935_s8  ;;  %v939_v35 = vmov 839922192  }
 0x226   : > { %v541_v31 = vcvt.s32.f32 %v539_v29  ;;  %v540_v32 = vcvt.s32.f32 %v538_v30 }
 0x295   : > { %v333_v37 = vpop.permute.xlu0 %332 }
 0x297   : > { %v335_v38 = vpop.permute.xlu1 %334 }
 0x298   : > { %v337_v39 = vsel %vm336_vm9, %v333_v37, %v335_v38  ;;  %v338_v40 = vsel %vm336_vm9, %v335_v38, %v333_v37  ;;  %v386_v37 = vunpack.c.l.s4 %v939_v35 }
 0x299   : > { %v341_v41 = vsel %vm339_vm10, %v338_v40, 0 }
 0x29a   : > { %v343_v42 = vcombine.low %v341_v41, %v337_v39  ;;  %v387_v1 = vunpack.c.0.s8 %v386_v37 }
 0x29c   : > { %v1084_v43 = vadd.s32 %v343_v42, %v330_v34  ;;  %v389_v42 = vshrl.u32 %v272_v2, 7 }
 0x29e   : > { %346 = vrot.lane.b32.xlu0 %v1084_v43, %s937_s15  ;;  %v345_v46 = vcombine.high %v1084_v43, %v1084_v43  ;;  %v390_v45 = vsub.s32 %v387_v1, %v389_v42  ;;  %v398_v49 = vmul.u32 8, %v389_v42  ;;  %v426_v6 = vadd.s32 8, %v389_v42 }
 0x2a0   : > { %348 = vrot.lane.b32.xlu1 %v345_v46, %s937_s15 }
 0x310   : > { %v347_v61 = vpop.permute.xlu0 %346 }
 0x312   : > { %v349_v62 = vpop.permute.xlu1 %348 }
 0x313   : > { %v351_v63 = vsel %vm350_vm11, %v347_v61, %v349_v62  ;;  %v352_v4 = vsel %vm350_vm11, %v349_v62, %v347_v61 }
 0x314   : > { %v355_v5 = vsel %vm353_vm12, %v352_v4, 0 }
 0x315   : > { %v357_v8 = vcombine.low %v355_v5, %v351_v63 }
 0x317   : > { %v1110_v9 = vadd.s32 %v357_v8, %v1084_v43 }
 0x319   : > { %360 = vrot.lane.b32.xlu0 %v1110_v9, %s938_s16  ;;  %v359_v11 = vcombine.high %v1110_v9, %v1110_v9 }
 0x31b   : > { %362 = vrot.lane.b32.xlu1 %v359_v11, %s938_s16 }
 0x31d   : > { %383 = vperm.xlu0 %816, %v1117_v13  }
 0x33c   : > { %542 = vadd.xlane.f32.xlu0 %v540_v32 }
 0x33f   : > { %544 = vadd.xlane.f32.xlu1 %v541_v31 }
 0x38b   : > { %v361_v33 = vpop.permute.xlu0 %360 }
 0x38d   : > { %v363_v34 = vpop.permute.xlu1 %362 }
 0x38e   : > { %v365_v38 = vsel %vm364_vm14, %v361_v33, %v363_v34  ;;  %v366_v39 = vsel %vm364_vm14, %v363_v34, %v361_v33 }
 0x38f   : > { %v369_v40 = vsel %vm367_vm15, %v366_v39, 0 }
 0x390   : > { %v371_v41 = vcombine.low %v369_v40, %v365_v38 }
 0x392   : > { %v372_v43 = vadd.s32 %v371_v41, %v1110_v9  ;;  %v427_v9 = vadd.s32 16, %v389_v42 }
 0x394   : > { %v378_v44 = vcombine.low %v936_v36, %v372_v43 }
 0x396   : > { %v379_v46 = vadd.s32 %v378_v44, %v372_v43 }
 0x398   : > { %v688_v47 = vadd.s32 4294967295, %v379_v46  ;;  %v384_v48 = vpop.permute.xlu0 %383 }
 0x399   : > { %v391_v3 = vrot.slane %v384_v48, %v390_v45 }
 0x39b   : > { %v392_v50 = vadd.s32 %v688_v47, %v391_v3 }
 0x39d   : > { %v399_v51 = vcombine.high %v392_v50, %v392_v50  ;;  %vm396_vm1 = vcmp.lt.s32.totalorder %v392_v50, 8  ;;  %v400_v52 = vadd.s32 %v398_v49, %v392_v50 }
 0x39e   : > { %vm397_vm2 = vmand %vm395_vm0, %vm396_vm1 }
 0x39f   : > { %v401_v53 = vadd.s32 %v399_v51, %v398_v49 }
 0x3a1   : > { %v402_v54 = vcombine.low %v400_v52, %v401_v53 }
 0x3a3   : > { %v403_v2 = vsel %vm397_vm2, %v402_v54, 4294967295 }
 0x3a4   : > { %v404_v55 = vcombine.high %v403_v2, %v403_v2  ;;  %v406_v56 = vsel %vm405_vm13, %v403_v2, 2147483648 }
 0x3a5   : > { %v407_v36 = vrot.slane %v406_v56, 4 }
 0x3a6   : > { %v416_v57 = vsel %vm405_vm13, %v404_v55, 2147483648 }
 0x3a7   : > { %vm408_vm3 = vcmp.gt.s32.totalorder %v406_v56, %v407_v36  ;;  %v417_v58 = vrot.slane %v416_v57, 4 }
 0x3a8   : > { %v409_v59 = vsel %vm408_vm3, %v406_v56, %v407_v36 }
 0x3a9   : > { %vm418_vm4 = vcmp.gt.s32.totalorder %v416_v57, %v417_v58  ;;  %v410_v60 = vrot.slane %v409_v59, 2 }
 0x3aa   : > { %v419_v61 = vsel %vm418_vm4, %v416_v57, %v417_v58 }
 0x3ab   : > { %v420_v62 = vrot.slane %v419_v61, 2  ;;  %vm411_vm5 = vcmp.gt.s32.totalorder %v409_v59, %v410_v60 }
 0x3ac   : > { %v412_v0 = vsel %vm411_vm5, %v409_v59, %v410_v60 }
 0x3ad   : > { %vm421_vm6 = vcmp.gt.s32.totalorder %v419_v61, %v420_v62  ;;  %v413_v63 = vrot.slane %v412_v0, 1 }
 0x3ae   : > { %v422_v4 = vsel %vm421_vm6, %v419_v61, %v420_v62 }
 0x3af   : > { %v423_v5 = vrot.slane %v422_v4, 1  ;;  %vm414_vm7 = vcmp.gt.s32.totalorder %v412_v0, %v413_v63 }
 0x3b0   : > { %v415_v7 = vsel %vm414_vm7, %v412_v0, %v413_v63 }
 0x3b1   : > { %vm424_vm9 = vcmp.gt.s32.totalorder %v422_v4, %v423_v5  ;;  %vm428_vm12 = vcmp.eq.s32.totalorder %v389_v42, %v415_v7  ;;  %vm430_vm13 = vcmp.eq.s32.totalorder %v426_v6, %v415_v7  ;;  %vm432_vm15 = vcmp.eq.s32.totalorder %v427_v9, %v415_v7 }
 0x3b2   : > { %v425_v8 = vsel %vm424_vm9, %v422_v4, %v423_v5 }
 0x3b3   : > { %vm429_vm10 = vcmp.eq.s32.totalorder %v389_v42, %v425_v8  ;;  %vm431_vm11 = vcmp.eq.s32.totalorder %v426_v6, %v425_v8  ;;  %vm433_vm14 = vcmp.eq.s32.totalorder %v427_v9, %v425_v8 }
 0x3b4   : > { %695 = vmatprep.mubr.msk.f32.mxu0 %vm429_vm10, %v940_v10  ;;  %697 = vmatprep.mubr.msk.f32.mxu1 %vm431_vm11, %v940_v10 }
 0x3b5   : > { %696 = vmatmul.mubr.msk.f32.vlgmr.msra.gmra.mxu0 %vm428_vm12, %v940_v10  ;;  %698 = vmatmul.mubr.msk.f32.vlgmr.msra.gmra.mxu1 %vm430_vm13, %v940_v10 }
 0x3b6   : > { %699 = vmatprep.mubr.msk.f32.mxu1 %vm433_vm14, %v940_v10 }
 0x3b9   : > { %700 = vmatmul.mubr.msk.f32.gmra.mxu1 %vm432_vm15, %v940_v10 }
 0x3c5   : > { %v543_v15 = vpop.xlane.xlu0 %542 }
 0x3c6   : > { %v546_v16 = vcvt.f32.s32 %v543_v15 }
 0x3c8   : > { %v545_v11 = vpop.xlane.xlu1 %544 }
 0x3c9   : > { %v547_v12 = vcvt.f32.s32 %v545_v11 }
 0x3cb   : > { %v548_v14 = vshll.u32 %v547_v12, 16 }
 0x3cd   : > { %v549_v17 = vadd.s32 %v548_v14, %v546_v16 }
 0x3cf   : > { %v550_v18 = vadd.s32 %v549_v17, %v1117_v13 }
 0x3d1   : > { %552 = vst.msk [vmem:[#allocation2] sm:$0x7] %vm234_vm8, %v550_v18 }
 0x475   : > { %v512_v19 = vpop.f32.mrf.mxu0  ;;  %v517_v20 = vpop.f32.mrf.mxu1 }
 0x476   : > { %532 = vst [vmem:[%s217_s25] sm:$0xff] %v512_v19  ;;  %533 = vst [vmem:[%s217_s25 + $0x8] sm:$0xff] %v517_v20 }
 0x477   : > { %v514_v21 = vpop.f32.mrf.mxu0  ;;  %v519_v22 = vpop.f32.mrf.mxu1 }
 0x479   : > { %v522_v23 = vpop.f32.mrf.mxu1 }
 0x47a   : > { %534 = vst [vmem:[%s217_s25 + $0x10] sm:$0xff] %v522_v23 }
 0x47b   : > { %v524_v13 = vpop.f32.mrf.mxu1 }
 0x47c   : > { %859 = shalt.err (!%p856_p7)
}
 0x47d   : > { %s860_s21 = scalar_lea.hbm %s1151_s29, 384  ;;  %s864_s15 = scalar_lea.hbm %s1204_s2, 768 }
 0x47e   : > { %p861_p10 = scmp.ne.s32.totalorder %s1151_s29, %s860_s21  ;;  %p865_p2 = scmp.lt.s32.totalorder %s1151_s29, %s1204_s2 }
 0x47f   : > { %p866_p12 = scmp.lt.s32.totalorder %s864_s15, %s860_s21 }
 0x480   : > { %p862_p4 = pnand %p861_p10, %p1009_p9 }
 0x481   : > { %p867_p8 = por %p866_p12, %p865_p2 }
 0x482   : > { %p863_p13 = pneg %p862_p4 }
 0x484   : > { %p868_p0 = pnand %p867_p8, %p863_p13 }
 0x486   : > { %871 = shalt.err (!%p868_p0)
}
 0x487   : > { %s942_s19 = smov 128  }
 0x488   : > { %742 = dma.vmem_to_hbm [thread:$0]  (%p1009_p9), %s1153_s26, 384, %s1151_s29, %s554_s12, %s942_s19, %s942_s19, %s934_s7  }
 0x489 PF: > { %s583_s25 = sand.u32 1, %s906_s9   ;;  %p1210_p1 = scmp.ge.s32.totalorder %s926_s14, 2 }
 0x48a   : > { %s584_s27 = scalar_lea.sflag [#allocation5], %s583_s25 }
 0x48b   : > { %p749_p3 = pnand %p1210_p1, %p1016_p11 }
 0x48d   : > { %p750_p5 = pneg %p749_p3 }
 0x48f   : > { %901 = dma.done.wait (%p750_p5), %s584_s27, 384  }
 0x490   : > { %903 = vsyncadd (%p750_p5), %s584_s27, 4294966912  ;;  %s18_s14 = sadd.s32 1, %s926_s14   ;;  %s1211_s9 = smov %s910_s10 }
 0x491   : > { %p15_p6 = scmp.ge.s32.totalorder %s18_s14, 4   ;;  %s1212_s10 = smov %s914_s11 }
 0x492   : > { %s1213_s11 = smov %s1014_s23  ;;  %s1214_s12 = smov %s922_s13 }
 0x493   : > { %s1215_s13 = smov %s1217_s17  ;;  %17 = sbr.rel (!%p15_p6) target bundleno = 6 (0x6), region = 80 }
 0x498   :  { %589 = vsyncpa [#allocation4], 1 }
 0x499   :  { %591 = vsyncpa [#allocation4 + $0x1], 1 }
 0x49a   :  { %592 = vsyncpa [#allocation5], 1 }
 0x49b   :  { %594 = vsyncpa [#allocation5 + $0x1], 1 }

</bundles_post_ra>
